<compile_context>
chip_gen: v7x
topology: tpu7x:2x2x1
jax: 0.10.0
libtpu: 0.0.40
codegen_flags: <defaults>
</compile_context>

<pallas_src>
import functools
import math

import jax
import jax.numpy as jnp
from jax.experimental import pallas as pl
from jax.experimental.pallas import tpu as pltpu

_VMEM_LIMIT = 32 * 1024 * 1024


# --------------------------------------------------------------------------
# Kernel 1: fused (image-backbone o token-embedding) projection + pos. enc.
#           out = x @ W_fused + (b_fused + PE)
# --------------------------------------------------------------------------
def _proj_kernel(x_ref, w_ref, pb_ref, o_ref):
    # f32 -> bf16 cast happens here (single read of the big f32 input).
    x = x_ref[...].astype(jnp.bfloat16)
    o_ref[...] = (
        jnp.dot(x, w_ref[...], preferred_element_type=jnp.float32) + pb_ref[...]
    )


def _proj_kernel_ktiled(x_ref, w_ref, pb_ref, o_ref, acc_ref):
    k = pl.program_id(1)

    @pl.when(k == 0)
    def _():
        acc_ref[...] = jnp.zeros_like(acc_ref)

    acc_ref[...] += jnp.dot(
        x_ref[...].astype(jnp.bfloat16), w_ref[...],
        preferred_element_type=jnp.float32,
    )

    @pl.when(k == pl.num_programs(1) - 1)
    def _():
        o_ref[...] = acc_ref[...] + pb_ref[...]


def _pick_k_tile(k, target=2048):
    # k is guaranteed to be a multiple of 128 (padded host-side).
    tk = min(target, k)
    while k % tk != 0:
        tk -= 128
    return tk


def _pick_m_tile(m, s):
    # Flatten (B, S) into one M axis; tiles are a multiple of S so the
    # positional-encoding pattern is periodic within a block.
    if m <= 512:
        return m
    tm = (512 // s) * s
    while m % tm != 0:
        tm -= s
    # TODO(synk): for ragged B*S where tm % 8 != 0 pad the M axis host-side.
    return max(tm, s)


def input_projection_call(x_flat, w_fused, pos_bias_block, tm):
    m, kflat = x_flat.shape
    d = w_fused.shape[1]
    n_m = m // tm

    if kflat * d * 2 <= 4 * 1024 * 1024:
        # Fused weight fits comfortably in VMEM -> no K-tiling, no
        # accumulator scratch, no pl.when machinery.
        return pl.pallas_call(
            _proj_kernel,
            out_shape=jax.ShapeDtypeStruct((m, d), jnp.float32),
            grid=(n_m,),
            in_specs=[
                pl.BlockSpec((tm, kflat), lambda i: (i, 0)),   # flattened imgs (f32)
                pl.BlockSpec((kflat, d), lambda i: (0, 0)),    # fused weight (bf16)
                pl.BlockSpec((tm, d), lambda i: (0, 0)),       # bias + PE
            ],
            out_specs=pl.BlockSpec((tm, d), lambda i: (i, 0)),
            compiler_params=pltpu.CompilerParams(
                dimension_semantics=("parallel",),
                vmem_limit_bytes=_VMEM_LIMIT,
            ),
        )(x_flat, w_fused, pos_bias_block)

    tk = _pick_k_tile(kflat)
    return pl.pallas_call(
        _proj_kernel_ktiled,
        out_shape=jax.ShapeDtypeStruct((m, d), jnp.float32),
        grid=(n_m, kflat // tk),
        in_specs=[
            pl.BlockSpec((tm, tk), lambda i, j: (i, j)),
            pl.BlockSpec((tk, d), lambda i, j: (j, 0)),
            pl.BlockSpec((tm, d), lambda i, j: (0, 0)),
        ],
        out_specs=pl.BlockSpec((tm, d), lambda i, j: (i, 0)),
        scratch_shapes=[pltpu.VMEM((tm, d), jnp.float32)],
        compiler_params=pltpu.CompilerParams(
            dimension_semantics=("parallel", "arbitrary"),
            vmem_limit_bytes=_VMEM_LIMIT,
        ),
    )(x_flat, w_fused, pos_bias_block)


# --------------------------------------------------------------------------
# Kernel 2: the whole pre-LN transformer encoder stack in one pallas_call.
#   grid = (batch-block 'parallel', layer 'arbitrary'); the f32 residual
#   stream stays resident in the output block across the layer axis, so the
#   next layer's weight DMA overlaps the current layer's compute.
# --------------------------------------------------------------------------
def _encoder_stack_kernel(
    x_ref,
    ln1_g_ref, ln1_b_ref,
    wqkv_ref, bqkv_ref, wo_ref, bo_ref,
    ln2_g_ref, ln2_b_ref,
    w1_ref, b1_ref, w2_ref, b2_ref,
    o_ref,
    *,
    num_heads,
):
    eps = 1e-5
    layer = pl.program_id(1)

    # Load the token embeddings into the layer-resident residual stream once.
    @pl.when(layer == 0)
    def _():
        o_ref[...] = x_ref[...]

    b_blk, s_len, d = o_ref.shape
    hd = d // num_heads
    m = b_blk * s_len

    x = o_ref[...].reshape(m, d)                     # (M, D) f32 residual

    def layer_norm(v, g, b):
        mu = jnp.mean(v, axis=-1, keepdims=True)
        var = jnp.mean((v - mu) ** 2, axis=-1, keepdims=True)
        return (v - mu) * jax.lax.rsqrt(var + eps) * g + b

    # ---- self-attention block (norm_first; dropout = identity in eval) ----
    xn = layer_norm(x, ln1_g_ref[0], ln1_b_ref[0]).astype(jnp.bfloat16)

    # ONE fused full-width QKV projection: (M, D) @ (D, 3D) -> f32.
    qkv = (
        jnp.dot(xn, wqkv_ref[0], preferred_element_type=jnp.float32)
        + bqkv_ref[0]
    )
    qkv = qkv.reshape(b_blk, s_len, 3 * d).astype(jnp.bfloat16)

    # Split heads with static lane slices -> head-batched (B_blk*H, S, hd).
    def split_heads(offset):
        return jnp.stack(
            [
                qkv[b, :, offset + h * hd: offset + (h + 1) * hd]
                for b in range(b_blk)
                for h in range(num_heads)
            ],
            axis=0,
        )

    qh = split_heads(0)          # 1/sqrt(hd) pre-folded into W_q / b_q
    kh = split_heads(d)
    vh = split_heads(2 * d)

    scores = jnp.einsum(
        "bqf,bkf->bqk", qh, kh, preferred_element_type=jnp.float32
    )                                                # (B_blk*H, S, S)
    scores = scores - jnp.max(scores, axis=-1, keepdims=True)
    p = jnp.exp(scores)
    # approx reciprocal (EUP slot); ~1e-3 deviation from exact softmax.
    p = p * pl.reciprocal(jnp.sum(p, axis=-1, keepdims=True), approx=True)

    ctx = jnp.einsum(
        "bqk,bkf->bqf", p.astype(jnp.bfloat16), vh,
        preferred_element_type=jnp.float32,
    )                                                # (B_blk*H, S, hd)

    # Merge heads back to a lane-dense (M, D) slab, then ONE output proj.
    ctx = jnp.concatenate(
        [
            jnp.concatenate(
                [ctx[b * num_heads + h] for h in range(num_heads)], axis=-1
            )
            for b in range(b_blk)
        ],
        axis=0,
    ).astype(jnp.bfloat16)                           # (M, D)
    sa = jnp.dot(ctx, wo_ref[0], preferred_element_type=jnp.float32) + bo_ref[0]
    x = x + sa                                       # residual

    # ---- feed-forward block (norm_first) ----
    xn2 = layer_norm(x, ln2_g_ref[0], ln2_b_ref[0]).astype(jnp.bfloat16)
    h1 = jnp.dot(xn2, w1_ref[0], preferred_element_type=jnp.float32) + b1_ref[0]
    h1 = jnp.maximum(h1, 0.0).astype(jnp.bfloat16)   # ReLU
    ff = jnp.dot(h1, w2_ref[0], preferred_element_type=jnp.float32) + b2_ref[0]

    o_ref[...] = (x + ff).reshape(b_blk, s_len, d)


def _layer_indexed(ndims):
    def index_map(b, l):
        return (l,) + (0,) * ndims
    return index_map


def _pick_batch_block(b):
    """Largest batch block that still leaves >= 2 'parallel' programs."""
    if b <= 1:
        return 1
    best = 1
    for cand in range(1, b + 1):
        if b % cand == 0 and b // cand >= 2:
            best = cand
    return best


def encoder_stack_call(tokens, sp, num_heads):
    bsz, s, d = tokens.shape
    num_layers = sp["wqkv"].shape[0]
    f = sp["w1"].shape[2]

    b_blk = _pick_batch_block(bsz)
    n_bblk = bsz // b_blk

    def wspec(*dims):
        return pl.BlockSpec((1,) + dims, _layer_indexed(len(dims)))

    in_specs = [
        pl.BlockSpec((b_blk, s, d), lambda b, l: (b, 0, 0)),      # tokens
        wspec(1, d), wspec(1, d),                                 # ln1 g / b
        wspec(d, 3 * d), wspec(1, 3 * d),                         # W_qkv / b_qkv
        wspec(d, d), wspec(1, d),                                 # W_o / b_o
        wspec(1, d), wspec(1, d),                                 # ln2 g / b
        wspec(d, f), wspec(1, f),                                 # W_1 / b_1
        wspec(f, d), wspec(1, d),                                 # W_2 / b_2
    ]
    kernel = functools.partial(_encoder_stack_kernel, num_heads=num_heads)
    return pl.pallas_call(
        kernel,
        out_shape=jax.ShapeDtypeStruct((bsz, s, d), jnp.float32),
        grid=(n_bblk, num_layers),
        in_specs=in_specs,
        out_specs=pl.BlockSpec((b_blk, s, d), lambda b, l: (b, 0, 0)),
        compiler_params=pltpu.CompilerParams(
            dimension_semantics=("parallel", "arbitrary"),
            vmem_limit_bytes=_VMEM_LIMIT,
        ),
    )(
        tokens,
        sp["ln1_g"], sp["ln1_b"],
        sp["wqkv"], sp["bqkv"], sp["wo"], sp["bo"],
        sp["ln2_g"], sp["ln2_b"],
        sp["w1"], sp["b1"], sp["w2"], sp["b2"],
    )


# --------------------------------------------------------------------------
# Glue: parameters, positional encoding, full forward
# --------------------------------------------------------------------------
def sinusoidal_pe(max_len, d_model):
    pos = jnp.arange(max_len, dtype=jnp.float32)[:, None]
    div = jnp.exp(
        jnp.arange(0, d_model, 2, dtype=jnp.float32)
        * (-math.log(10000.0) / d_model)
    )
    pe = jnp.zeros((max_len, d_model), dtype=jnp.float32)
    pe = pe.at[:, 0::2].set(jnp.sin(pos * div))
    pe = pe.at[:, 1::2].set(jnp.cos(pos * div))
    return pe


def init_params(key, c, h, w, hidden, num_layers, num_heads, max_seq_len,
                ffn_dim=None):
    if ffn_dim is None:
        ffn_dim = hidden   # TODO(synk): PyTorch default dim_feedforward is 2048
    assert hidden % num_heads == 0
    hd = hidden // num_heads
    kflat = c * h * w
    kflat_pad = ((kflat + 127) // 128) * 128

    def normal(k_, shape):
        return (0.02 * jax.random.normal(k_, shape)).astype(jnp.float32)

    keys = jax.random.split(key, 8)

    # Image-backbone Linear (synthetic) and token-embedding Linear: no
    # nonlinearity between them, so fold into a single projection:
    #   (x @ W_img + b_img) @ W_emb + b_emb
    #     == x @ (W_img @ W_emb) + (b_img @ W_emb + b_emb)
    w_img = normal(keys[0], (kflat, hidden))
    if kflat_pad != kflat:                       # zero rows: padded K is a no-op
        w_img = jnp.pad(w_img, ((0, kflat_pad - kflat), (0, 0)))
    b_img = jnp.zeros((1, hidden), jnp.float32)
    w_emb = normal(keys[1], (hidden, hidden))
    b_emb = jnp.zeros((1, hidden), jnp.float32)
    w_fused = (w_img @ w_emb).astype(jnp.bfloat16)
    b_fused = b_img @ w_emb + b_emb

    # Fused QKV weight (D, 3D); 1/sqrt(head_dim) folded into the Q columns so
    # the kernel never scales the (S, S) score matrix.  (A real checkpoint
    # would need the same fold + column concat applied offline.)
    scale = 1.0 / math.sqrt(hd)
    wq = normal(keys[2], (num_layers, hidden, hidden)) * scale
    wk = normal(keys[3], (num_layers, hidden, hidden))
    wv = normal(keys[4], (num_layers, hidden, hidden))
    stack = {
        "ln1_g": jnp.ones((num_layers, 1, hidden), jnp.float32),
        "ln1_b": jnp.zeros((num_layers, 1, hidden), jnp.float32),
        "wqkv": jnp.concatenate([wq, wk, wv], axis=-1).astype(jnp.bfloat16),
        "bqkv": jnp.zeros((num_layers, 1, 3 * hidden), jnp.float32),
        "wo": normal(keys[5], (num_layers, hidden, hidden)).astype(jnp.bfloat16),
        "bo": jnp.zeros((num_layers, 1, hidden), jnp.float32),
        "ln2_g": jnp.ones((num_layers, 1, hidden), jnp.float32),
        "ln2_b": jnp.zeros((num_layers, 1, hidden), jnp.float32),
        "w1": normal(keys[6], (num_layers, hidden, ffn_dim)).astype(jnp.bfloat16),
        "b1": jnp.zeros((num_layers, 1, ffn_dim), jnp.float32),
        "w2": normal(keys[7], (num_layers, ffn_dim, hidden)).astype(jnp.bfloat16),
        "b2": jnp.zeros((num_layers, 1, hidden), jnp.float32),
    }
    return {
        "w_fused": w_fused,
        "b_fused": b_fused,
        "pe": sinusoidal_pe(max_seq_len, hidden),
        "stack": stack,
        "num_heads": num_heads,
    }


def transformer_image_sequence_encoder(x, params):
    """x: (B, S, C, H, W) float32 -> (B, S, hidden) float32."""
    b, s = x.shape[0], x.shape[1]
    kflat = x.shape[2] * x.shape[3] * x.shape[4]
    kflat_pad, hidden = params["w_fused"].shape

    # AbstractImageEncoder.forward: view(-1,C,H,W) -> encode -> view(B,S,-1).
    # Here: flatten + fused (image-backbone o embedding) linear projection,
    # with bias and positional encoding folded into the epilogue; f32->bf16
    # cast of the images happens inside the kernel.
    x_flat = x.reshape(b * s, kflat)
    if kflat_pad != kflat:
        x_flat = jnp.pad(x_flat, ((0, 0), (0, kflat_pad - kflat)))

    tm = _pick_m_tile(b * s, s)
    pos_bias_block = (
        jnp.tile(params["pe"][:s], (tm // s, 1)) + params["b_fused"]
    )                                                          # (TM, D), tiny
    tokens = input_projection_call(
        x_flat, params["w_fused"], pos_bias_block, tm
    ).reshape(b, s, hidden)

    # Whole transformer encoder stack in a single fused pallas_call.
    return encoder_stack_call(tokens, params["stack"], params["num_heads"])


if __name__ == "__main__":
    B, S, C, H, W = 2, 8, 4, 16, 16
    # hidden chosen as a multiple of 128 so every kernel output is lane-dense.
    hidden_dim, num_layers, num_heads, max_seq_len = 128, 2, 8, 16

    key = jax.random.PRNGKey(0)
    kx, kp = jax.random.split(key)
    x = jax.random.normal(kx, (B, S, C, H, W), dtype=jnp.float32)
    params = init_params(kp, C, H, W, hidden_dim, num_layers, num_heads,
                         max_seq_len)

    out = transformer_image_sequence_encoder(x, params)
    out = jax.block_until_ready(out)
    assert out.shape == (B, S, hidden_dim)
    assert bool(jnp.all(jnp.isfinite(out)))
    print("KERNEL_OK")
</pallas_src>

<mosaic_0001>
module attributes {stable_mosaic.version = 11 : i64} {
  func.func @_proj_kernel(%arg0: i32, %arg1: memref<16x1024xf32, #tpu.memory_space<vmem>>, %arg2: memref<1024x128xbf16, #tpu.memory_space<vmem>>, %arg3: memref<16x128xf32, #tpu.memory_space<vmem>>, %arg4: memref<16x128xf32, #tpu.memory_space<vmem>>) attributes {dimension_semantics = [#tpu.dimension_semantics<parallel>], iteration_bounds = array<i64: 1>, scalar_prefetch = 0 : i64, scratch_operands = 0 : i64, tpu.core_type = #tpu.core_type<tc>, window_params = [{transform_indices = @transform_0, window_bounds = array<i64: 16, 1024>}, {pipeline_mode = #tpu.pipeline_mode<synchronous>, transform_indices = @transform_1, window_bounds = array<i64: 1024, 128>}, {pipeline_mode = #tpu.pipeline_mode<synchronous>, transform_indices = @transform_2, window_bounds = array<i64: 16, 128>}, {transform_indices = @transform_3, window_bounds = array<i64: 16, 128>}]} {
    %c0 = arith.constant 0 : index
    %c0_0 = arith.constant 0 : index
    %0 = vector.load %arg1[%c0, %c0_0] : memref<16x1024xf32, #tpu.memory_space<vmem>>, vector<16x1024xf32>
    %1 = arith.truncf %0 : vector<16x1024xf32> to vector<16x1024xbf16>
    %c0_1 = arith.constant 0 : index
    %c0_2 = arith.constant 0 : index
    %2 = vector.load %arg2[%c0_1, %c0_2] : memref<1024x128xbf16, #tpu.memory_space<vmem>>, vector<1024x128xbf16>
    %cst = arith.constant dense<0.000000e+00> : vector<16x128xf32>
    %3 = tpu.matmul %1, %2, %cst {dimension_numbers = #tpu.dot_dimension_numbers<[1], [0], [0], [1], [0, 0, 1, 1], [], []>} : vector<16x1024xbf16>, vector<1024x128xbf16>, vector<16x128xf32> -> vector<16x128xf32>
    %c0_3 = arith.constant 0 : index
    %c0_4 = arith.constant 0 : index
    %4 = vector.load %arg3[%c0_3, %c0_4] : memref<16x128xf32, #tpu.memory_space<vmem>>, vector<16x128xf32>
    %5 = arith.addf %3, %4 : vector<16x128xf32>
    %c0_5 = arith.constant 0 : index
    %c0_6 = arith.constant 0 : index
    %6 = vector.load %arg4[%c0_5, %c0_6] : memref<16x128xf32, #tpu.memory_space<vmem>>, vector<16x128xf32>
    tpu.vector_store %arg4[%c0_5, %c0_6], %5 {strides = array<i32>} : memref<16x128xf32, #tpu.memory_space<vmem>>, vector<16x128xf32>,
    return
  }
  func.func @transform_0(%arg0: i32) -> (i32, i32) {
    %c0_i32 = arith.constant 0 : i32
    %c0_i32_0 = arith.constant 0 : i32
    return %arg0, %c0_i32 : i32, i32
  }
  func.func @transform_1(%arg0: i32) -> (i32, i32) {
    %c0_i32 = arith.constant 0 : i32
    %c0_i32_0 = arith.constant 0 : i32
    %c0_i32_1 = arith.constant 0 : i32
    return %c0_i32, %c0_i32_0 : i32, i32
  }
  func.func @transform_2(%arg0: i32) -> (i32, i32) {
    %c0_i32 = arith.constant 0 : i32
    %c0_i32_0 = arith.constant 0 : i32
    %c0_i32_1 = arith.constant 0 : i32
    return %c0_i32, %c0_i32_0 : i32, i32
  }
  func.func @transform_3(%arg0: i32) -> (i32, i32) {
    %c0_i32 = arith.constant 0 : i32
    %c0_i32_0 = arith.constant 0 : i32
    return %arg0, %c0_i32 : i32, i32
  }
}

</mosaic_0001>

<bundles_post_ra>
// kernel: tpu_custom_call.1
= control target key start
LH: loop header
LB: loop body
LE: loop exit
PB: predicated region body
PF: predicated region fallthrough
CT: control target
= control target key end

     0   :  { %8 = vsyncpa [#allocation3], 0  ;;  %s1181_s0 = inlined_call_operand.hbm [shape: f32[16,1024], index: 0, kind: input, shape index: {}]   ;;  %s1182_s1 = inlined_call_operand.hbm [shape: bf16[1024,128], index: 1, kind: input, shape index: {}]   ;;  %s1183_s2 = inlined_call_operand.hbm [shape: f32[16,128], index: 2, kind: input, shape index: {}]   ;;  %s1184_s3 = inlined_call_operand.hbm [shape: f32[16,128], index: 3, kind: output, shape index: {}]  }
   0x1   :  { %9 = vsyncpa [#allocation6], 0 }
   0x2   :  { %10 = vsyncpa [#allocation4], 0  ;;  %s1098_s12 = smov [#allocation5]   ;;  %s1004_s16 = scalar_lea.hbm %s1182_s1, 8192 }
   0x3   :  { %s28_s13 = sshll.u32 %s1098_s12, 4  ;;  %p1005_p0 = scmp.ne.s32.totalorder %s1182_s1, %s1004_s16  ;;  %s29_s13 = int_to_ptr.vmem [resolvable:$true] %s28_s13 }
   0x4   :  { %p1008_p1 = scmp.lt.u32.totalorder %s1004_s16, %s1182_s1 }
   0x6   :  { %p1010_p2 = pnand %p1008_p1, %p1005_p0 }
   0x8   :  { %1013 = shalt.err (!%p1010_p2)
}
   0x9   :  { %s1014_s21 = scalar_lea.vmem %s29_s13, 8192  ;;  %p1019_p4 = scmp.lt.s32.totalorder %s29_s13, %s29_s13 }
   0xa   :  { %p1015_p3 = scmp.ne.s32.totalorder %s29_s13, %s1014_s21  ;;  %p1020_p5 = scmp.lt.s32.totalorder %s1014_s21, %s1014_s21 }
   0xc   :  { %p1021_p6 = por %p1020_p5, %p1019_p4 }
   0xe   :  { %p1022_p7 = pnand %p1021_p6, %p1015_p3 }
  0x10   :  { %1025 = shalt.err (!%p1022_p7)
}
  0x11   :  { %s1099_s22 = smov 64   ;;  %s1100_s23 = smov 4  }
  0x12   :  { %34 = dma.hbm_to_vmem [thread:$0]  %s1182_s1, 8192, %s29_s13, [#allocation6], %s1099_s22, %s1099_s22, %s1100_s23  }
  0x13   :  { %s1101_s26 = smov [#allocation2]   ;;  %s1026_s30 = scalar_lea.hbm %s1181_s0, 2048 }
  0x14   :  { %s16_s27 = sshll.u32 %s1101_s26, 4  ;;  %p1027_p8 = scmp.ne.s32.totalorder %s1181_s0, %s1026_s30  ;;  %s17_s27 = int_to_ptr.vmem [resolvable:$true] %s16_s27 }
  0x15   :  { %p1030_p9 = scmp.lt.u32.totalorder %s1026_s30, %s1181_s0 }
  0x17   :  { %p1032_p10 = pnand %p1030_p9, %p1027_p8 }
  0x19   :  { %1035 = shalt.err (!%p1032_p10)
}
  0x1a   :  { %s1036_s8 = scalar_lea.vmem %s17_s27, 2048  ;;  %p1041_p12 = scmp.lt.s32.totalorder %s17_s27, %s17_s27 }
  0x1b   :  { %p1037_p11 = scmp.ne.s32.totalorder %s17_s27, %s1036_s8  ;;  %p1042_p13 = scmp.lt.s32.totalorder %s1036_s8, %s1036_s8 }
  0x1d   :  { %p1043_p0 = por %p1042_p13, %p1041_p12 }
  0x1f   :  { %p1044_p1 = pnand %p1043_p0, %p1037_p11 }
  0x21   :  { %1047 = shalt.err (!%p1044_p1)
}
  0x22   :  { %s1102_s1 = smov 1024   ;;  %s1103_s11 = smov [#allocation7]  }
  0x23   :  { %22 = dma.hbm_to_vmem [thread:$0]  %s1181_s0, 2048, %s17_s27, [#allocation3], %s1102_s1, %s1102_s1, %s1099_s22  }
  0x24   :  { %s40_s12 = sshll.u32 %s1103_s11, 4  ;;  %s1048_s15 = scalar_lea.hbm %s1183_s2, 256  ;;  %s41_s12 = int_to_ptr.vmem [resolvable:$true] %s40_s12 }
  0x25   :  { %p1049_p2 = scmp.ne.s32.totalorder %s1183_s2, %s1048_s15  ;;  %p1052_p3 = scmp.lt.u32.totalorder %s1048_s15, %s1183_s2 }
  0x27   :  { %p1054_p4 = pnand %p1052_p3, %p1049_p2 }
  0x29   :  { %1057 = shalt.err (!%p1054_p4)
}
  0x2a   :  { %s1058_s20 = scalar_lea.vmem %s41_s12, 256  ;;  %p1063_p6 = scmp.lt.s32.totalorder %s41_s12, %s41_s12 }
  0x2b   :  { %p1059_p5 = scmp.ne.s32.totalorder %s41_s12, %s1058_s20  ;;  %p1064_p7 = scmp.lt.s32.totalorder %s1058_s20, %s1058_s20 }
  0x2d   :  { %p1065_p8 = por %p1064_p7, %p1063_p6 }
  0x2f   :  { %p1066_p9 = pnand %p1065_p8, %p1059_p5 }
  0x31   :  { %1069 = shalt.err (!%p1066_p9)
}
  0x32   :  { %s1104_s0 = smov 128   ;;  %s1105_s21 = smov 8  }
  0x33   :  { %46 = dma.hbm_to_vmem [thread:$0]  %s1183_s2, 256, %s41_s12, [#allocation6], %s1104_s0, %s1104_s0, %s1105_s21  }
  0x34   :  { %1092 = dma.done.wait [#allocation3], 2048  }
  0x35   :  { %1093 = vsyncadd [#allocation3], 4294965248 }
  0x36   :  { %1094 = dma.done.wait [#allocation6], 8448  }
  0x37   :  { %1095 = vsyncadd [#allocation6], 4294958848  ;;  %v940_v0 = vld [vmem:[#allocation5 + $0x40] sm:$0xff]   ;;  %v944_v4 = vld [vmem:[#allocation5 + $0x48] sm:$0xff]   ;;  %s1106_s2 = smov [#allocation8]  }
  0x38   :  { %v941_v1 = vld [vmem:[#allocation5 + $0xc0] sm:$0xff]   ;;  %843 = vmatprep.subr.bf16.mxu0 %v940_v0  ;;  %v945_v5 = vld [vmem:[#allocation5 + $0xc8] sm:$0xff]   ;;  %v948_v8 = vld [vmem:[#allocation5 + $0x50] sm:$0xff]   ;;  %s766_s24 = sshll.u32 %s1106_s2, 4  ;;  %s767_s24 = int_to_ptr.vmem [resolvable:$true] %s766_s24 }
  0x39   :  { %v942_v2 = vld [vmem:[#allocation5] sm:$0xff]   ;;  %865 = vmatprep.subr.bf16.mxu1 %v941_v1  ;;  %v946_v6 = vld [vmem:[#allocation5 + $0x8] sm:$0xff]   ;;  %v949_v9 = vld [vmem:[#allocation5 + $0xd0] sm:$0xff]   ;;  %s1070_s25 = scalar_lea.vmem %s767_s24, 256  ;;  %p1075_p11 = scmp.lt.s32.totalorder %s767_s24, %s767_s24 }
  0x3a   :  { %v943_v3 = vld [vmem:[#allocation5 + $0x80] sm:$0xff]   ;;  %844 = vmatpush3.bf16.msra.mxu0 %v942_v2  ;;  %v947_v7 = vld [vmem:[#allocation5 + $0x88] sm:$0xff]   ;;  %v950_v10 = vld [vmem:[#allocation5 + $0x10] sm:$0xff]   ;;  %p1071_p10 = scmp.ne.s32.totalorder %s767_s24, %s1070_s25  ;;  %p1076_p12 = scmp.lt.s32.totalorder %s1070_s25, %s1070_s25 }
  0x3b   :  { %866 = vmatpush3.bf16.msra.mxu1 %v943_v3  ;;  %845 = vmatprep.subr.bf16.mxu0 %v944_v4  ;;  %v951_v11 = vld [vmem:[#allocation5 + $0x90] sm:$0xff]   ;;  %v952_v12 = vld [vmem:[#allocation5 + $0x58] sm:$0xff]   ;;  %v956_v16 = vld [vmem:[#allocation5 + $0x60] sm:$0xff]  }
  0x3c   :  { %867 = vmatprep.subr.bf16.mxu1 %v945_v5  ;;  %v953_v13 = vld [vmem:[#allocation5 + $0xd8] sm:$0xff]   ;;  %v957_v17 = vld [vmem:[#allocation5 + $0xe0] sm:$0xff]   ;;  %v960_v20 = vld [vmem:[#allocation5 + $0x68] sm:$0xff]   ;;  %p1077_p13 = por %p1076_p12, %p1075_p11 }
  0x3d   :  { %v954_v14 = vld [vmem:[#allocation5 + $0x18] sm:$0xff]   ;;  %v958_v18 = vld [vmem:[#allocation5 + $0x20] sm:$0xff]   ;;  %v961_v21 = vld [vmem:[#allocation5 + $0xe8] sm:$0xff]  }
  0x3e   :  { %846 = vmatpush3.bf16.msra.mxu0 %v946_v6  ;;  %v955_v15 = vld [vmem:[#allocation5 + $0x98] sm:$0xff]   ;;  %v959_v19 = vld [vmem:[#allocation5 + $0xa0] sm:$0xff]   ;;  %v962_v22 = vld [vmem:[#allocation5 + $0x28] sm:$0xff]   ;;  %p1078_p0 = pnand %p1077_p13, %p1071_p10 }
  0x3f   :  { %868 = vmatpush3.bf16.msra.mxu1 %v947_v7  ;;  %847 = vmatprep.subr.bf16.mxu0 %v948_v8  ;;  %v963_v23 = vld [vmem:[#allocation5 + $0xa8] sm:$0xff]   ;;  %v964_v24 = vld [vmem:[#allocation5 + $0x70] sm:$0xff]   ;;  %v968_v28 = vld [vmem:[#allocation5 + $0x78] sm:$0xff]  }
  0x40   :  { %869 = vmatprep.subr.bf16.mxu1 %v949_v9  ;;  %v965_v25 = vld [vmem:[#allocation5 + $0xf0] sm:$0xff]   ;;  %v969_v29 = vld [vmem:[#allocation5 + $0xf8] sm:$0xff]   ;;  %v58_v32 = vld [vmem:[#allocation2 + $0x8] sm:$0xff] }
  0x41   :  { %v966_v26 = vld [vmem:[#allocation5 + $0x30] sm:$0xff]   ;;  %v970_v30 = vld [vmem:[#allocation5 + $0x38] sm:$0xff]   ;;  %v66_v33 = vld [vmem:[#allocation2 + $0x48] sm:$0xff] }
  0x42   :  { %848 = vmatpush3.bf16.msra.mxu0 %v950_v10  ;;  %v967_v27 = vld [vmem:[#allocation5 + $0xb0] sm:$0xff]   ;;  %v971_v31 = vld [vmem:[#allocation5 + $0xb8] sm:$0xff]   ;;  %v74_v35 = vpack.c.bf16 %v66_v33, %v58_v32  ;;  %v57_v37 = vld [vmem:[#allocation2] sm:$0xff] }
  0x43   :  { %870 = vmatpush3.bf16.msra.mxu1 %v951_v11  ;;  %849 = vmatprep.subr.bf16.mxu0 %v952_v12  ;;  %v60_v34 = vld [vmem:[#allocation2 + $0x18] sm:$0xff]  ;;  %v65_v38 = vld [vmem:[#allocation2 + $0x40] sm:$0xff]  ;;  %v59_v41 = vld [vmem:[#allocation2 + $0x10] sm:$0xff] }
  0x44   :  { %871 = vmatprep.subr.bf16.mxu1 %v953_v13  ;;  %v68_v36 = vld [vmem:[#allocation2 + $0x58] sm:$0xff]  ;;  %v73_v40 = vpack.c.bf16 %v65_v38, %v57_v37  ;;  %v67_v42 = vld [vmem:[#allocation2 + $0x50] sm:$0xff]  ;;  %627 = vmatprep.mubr.bf16.mxu0 %v74_v35  ;;  %v972_v44 = vld [vmem:[#allocation5 + $0x140] sm:$0xff]  }
  0x45   :  { %v76_v39 = vpack.c.bf16 %v68_v36, %v60_v34  ;;  %v75_v43 = vpack.c.bf16 %v67_v42, %v59_v41  ;;  %v973_v45 = vld [vmem:[#allocation5 + $0x1c0] sm:$0xff]   ;;  %v976_v48 = vld [vmem:[#allocation5 + $0x148] sm:$0xff]   ;;  %v980_v52 = vld [vmem:[#allocation5 + $0x150] sm:$0xff]  }
  0x46   :  { %850 = vmatpush3.bf16.msra.mxu0 %v954_v14  ;;  %v974_v46 = vld [vmem:[#allocation5 + $0x100] sm:$0xff]   ;;  %v977_v49 = vld [vmem:[#allocation5 + $0x1c8] sm:$0xff]   ;;  %v981_v53 = vld [vmem:[#allocation5 + $0x1d0] sm:$0xff]  }
  0x47   :  { %872 = vmatpush3.bf16.msra.mxu1 %v955_v15  ;;  %851 = vmatprep.subr.bf16.mxu0 %v956_v16  ;;  %v975_v47 = vld [vmem:[#allocation5 + $0x180] sm:$0xff]   ;;  %v978_v50 = vld [vmem:[#allocation5 + $0x108] sm:$0xff]   ;;  %v982_v54 = vld [vmem:[#allocation5 + $0x110] sm:$0xff]  }
  0x48   :  { %873 = vmatprep.subr.bf16.mxu1 %v957_v17  ;;  %668 = vmatprep.mubr.bf16.mxu1 %v76_v39  ;;  %v979_v51 = vld [vmem:[#allocation5 + $0x188] sm:$0xff]   ;;  %v983_v55 = vld [vmem:[#allocation5 + $0x190] sm:$0xff]   ;;  %v984_v56 = vld [vmem:[#allocation5 + $0x158] sm:$0xff]  }
  0x49   :  { %v985_v57 = vld [vmem:[#allocation5 + $0x1d8] sm:$0xff]   ;;  %v988_v60 = vld [vmem:[#allocation5 + $0x160] sm:$0xff]   ;;  %v992_v0 = vld [vmem:[#allocation5 + $0x168] sm:$0xff]  }
  0x4a   :  { %852 = vmatpush3.bf16.msra.mxu0 %v958_v18  ;;  %v986_v58 = vld [vmem:[#allocation5 + $0x118] sm:$0xff]   ;;  %v989_v61 = vld [vmem:[#allocation5 + $0x1e0] sm:$0xff]   ;;  %v993_v1 = vld [vmem:[#allocation5 + $0x1e8] sm:$0xff]  }
  0x4b   :  { %874 = vmatpush3.bf16.msra.mxu1 %v959_v19  ;;  %853 = vmatprep.subr.bf16.mxu0 %v960_v20  ;;  %v987_v59 = vld [vmem:[#allocation5 + $0x198] sm:$0xff]   ;;  %v990_v62 = vld [vmem:[#allocation5 + $0x120] sm:$0xff]   ;;  %v994_v2 = vld [vmem:[#allocation5 + $0x128] sm:$0xff]  }
  0x4c   :  { %875 = vmatprep.subr.bf16.mxu1 %v961_v21  ;;  %v991_v63 = vld [vmem:[#allocation5 + $0x1a0] sm:$0xff]   ;;  %v995_v3 = vld [vmem:[#allocation5 + $0x1a8] sm:$0xff]   ;;  %v996_v4 = vld [vmem:[#allocation5 + $0x170] sm:$0xff]  }
  0x4d   :  { %v997_v5 = vld [vmem:[#allocation5 + $0x1f0] sm:$0xff]   ;;  %v1000_v8 = vld [vmem:[#allocation5 + $0x178] sm:$0xff]   ;;  %v62_v12 = vld [vmem:[#allocation2 + $0x28] sm:$0xff] }
  0x4e   :  { %854 = vmatpush3.bf16.msra.mxu0 %v962_v22  ;;  %v998_v6 = vld [vmem:[#allocation5 + $0x130] sm:$0xff]   ;;  %v1001_v9 = vld [vmem:[#allocation5 + $0x1f8] sm:$0xff]   ;;  %v70_v13 = vld [vmem:[#allocation2 + $0x68] sm:$0xff] }
  0x4f   :  { %876 = vmatpush3.bf16.msra.mxu1 %v963_v23  ;;  %855 = vmatprep.subr.bf16.mxu0 %v964_v24  ;;  %v999_v7 = vld [vmem:[#allocation5 + $0x1b0] sm:$0xff]   ;;  %v1002_v10 = vld [vmem:[#allocation5 + $0x138] sm:$0xff]   ;;  %v78_v16 = vpack.c.bf16 %v70_v13, %v62_v12  ;;  %v61_v18 = vld [vmem:[#allocation2 + $0x20] sm:$0xff] }
  0x50   :  { %877 = vmatprep.subr.bf16.mxu1 %v965_v25  ;;  %v1003_v11 = vld [vmem:[#allocation5 + $0x1b8] sm:$0xff]   ;;  %v69_v19 = vld [vmem:[#allocation2 + $0x60] sm:$0xff]  ;;  %v63_v20 = vld [vmem:[#allocation2 + $0x30] sm:$0xff] }
  0x51   :  { %v64_v14 = vld [vmem:[#allocation2 + $0x38] sm:$0xff]  ;;  %v77_v21 = vpack.c.bf16 %v69_v19, %v61_v18  ;;  %v71_v22 = vld [vmem:[#allocation2 + $0x70] sm:$0xff]  ;;  %v210_v33 = vld [vmem:[#allocation7 + $0x8] sm:$0xff] }
  0x52   :  { %856 = vmatpush3.bf16.msra.mxu0 %v966_v26  ;;  %v72_v15 = vld [vmem:[#allocation2 + $0x78] sm:$0xff]  ;;  %v79_v23 = vpack.c.bf16 %v71_v22, %v63_v20  ;;  %v209_v26 = vld [vmem:[#allocation7] sm:$0xff] }
  0x53   :  { %878 = vmatpush3.bf16.msra.mxu1 %v967_v27  ;;  %857 = vmatprep.subr.bf16.mxu0 %v968_v28  ;;  %v80_v17 = vpack.c.bf16 %v72_v15, %v64_v14 }
  0x54   :  { %879 = vmatprep.subr.bf16.mxu1 %v969_v29 }
  0x56   :  { %858 = vmatpush3.bf16.msra.mxu0 %v970_v30 }
  0x57   :  { %880 = vmatpush3.bf16.msra.mxu1 %v971_v31  ;;  %887 = vmatprep.subr.bf16.mxu0 %v972_v44 }
  0x58   :  { %909 = vmatprep.subr.bf16.mxu1 %v973_v45 }
  0x59   :  { %628 = vmatmul.mubr.bf16.vlgmr.msra.gmra.mrb[0].mxu0 %v73_v40 }
  0x5a   :  { %669 = vmatmul.mubr.bf16.vlgmr.msra.gmra.mrb[0].mxu1 %v75_v43  ;;  %888 = vmatpush3.bf16.msra.mxu0 %v974_v46 }
  0x5b   :  { %910 = vmatpush3.bf16.msra.mxu1 %v975_v47  ;;  %889 = vmatprep.subr.bf16.mxu0 %v976_v48 }
  0x5c   :  { %911 = vmatprep.subr.bf16.mxu1 %v977_v49  ;;  %709 = vmatprep.mubr.bf16.mxu0 %v78_v16 }
  0x5d   :  { %750 = vmatprep.mubr.bf16.mxu1 %v80_v17 }
  0x5e   :  { %890 = vmatpush3.bf16.msra.mxu0 %v978_v50 }
  0x5f   :  { %912 = vmatpush3.bf16.msra.mxu1 %v979_v51  ;;  %891 = vmatprep.subr.bf16.mxu0 %v980_v52 }
  0x60   :  { %913 = vmatprep.subr.bf16.mxu1 %v981_v53 }
  0x62   :  { %892 = vmatpush3.bf16.msra.mxu0 %v982_v54 }
  0x63   :  { %914 = vmatpush3.bf16.msra.mxu1 %v983_v55  ;;  %893 = vmatprep.subr.bf16.mxu0 %v984_v56 }
  0x64   :  { %915 = vmatprep.subr.bf16.mxu1 %v985_v57 }
  0x66   :  { %894 = vmatpush3.bf16.msra.mxu0 %v986_v58 }
  0x67   :  { %916 = vmatpush3.bf16.msra.mxu1 %v987_v59  ;;  %895 = vmatprep.subr.bf16.mxu0 %v988_v60 }
  0x68   :  { %917 = vmatprep.subr.bf16.mxu1 %v989_v61 }
  0x6a   :  { %896 = vmatpush3.bf16.msra.mxu0 %v990_v62 }
  0x6b   :  { %918 = vmatpush3.bf16.msra.mxu1 %v991_v63  ;;  %897 = vmatprep.subr.bf16.mxu0 %v992_v0 }
  0x6c   :  { %919 = vmatprep.subr.bf16.mxu1 %v993_v1 }
  0x6e   :  { %898 = vmatpush3.bf16.msra.mxu0 %v994_v2 }
  0x6f   :  { %920 = vmatpush3.bf16.msra.mxu1 %v995_v3  ;;  %899 = vmatprep.subr.bf16.mxu0 %v996_v4 }
  0x70   :  { %921 = vmatprep.subr.bf16.mxu1 %v997_v5 }
  0x72   :  { %900 = vmatpush3.bf16.msra.mxu0 %v998_v6 }
  0x73   :  { %922 = vmatpush3.bf16.msra.mxu1 %v999_v7  ;;  %901 = vmatprep.subr.bf16.mxu0 %v1000_v8 }
  0x74   :  { %923 = vmatprep.subr.bf16.mxu1 %v1001_v9 }
  0x76   :  { %902 = vmatpush3.bf16.msra.mxu0 %v1002_v10 }
  0x77   :  { %924 = vmatpush3.bf16.msra.mxu1 %v1003_v11 }
  0x79   :  { %710 = vmatmul.mubr.bf16.vlgmr.msra.gmra.mrb[4].mxu0 %v77_v21 }
  0x7a   :  { %751 = vmatmul.mubr.bf16.vlgmr.msra.gmra.mrb[4].mxu1 %v79_v23 }
 0x12c   :  { %v859_v24 = vpop.f32.mrb[0].mxu0 }
 0x12d   :  { %v881_v25 = vpop.f32.mrb[0].mxu1  ;;  %v860_v27 = vpop.f32.mrb[1].mxu0 }
 0x12e   :  { %v861_v28 = vadd.f32 %v860_v27, %v859_v24  ;;  %v882_v29 = vpop.f32.mrb[1].mxu1  ;;  %v862_v30 = vpop.f32.mrb[2].mxu0 }
 0x12f   :  { %v883_v31 = vadd.f32 %v882_v29, %v881_v25  ;;  %v884_v32 = vpop.f32.mrb[2].mxu1  ;;  %v863_v34 = vpop.f32.mrb[3].mxu0 }
 0x130   :  { %v630_v35 = vadd.f32 %v861_v28, %v209_v26  ;;  %v864_v36 = vadd.f32 %v863_v34, %v862_v30  ;;  %v885_v37 = vpop.f32.mrb[3].mxu1 }
 0x131   :  { %v886_v38 = vadd.f32 %v885_v37, %v884_v32 }
 0x132   :  { %v671_v39 = vadd.f32 %v883_v31, %v630_v35  ;;  %v633_v40 = vadd.f32 %v864_v36, %v210_v33 }
 0x134   :  { %v674_v41 = vadd.f32 %v886_v38, %v633_v40 }
 0x14c   :  { %v903_v42 = vpop.f32.mrb[4].mxu0 }
 0x14d   :  { %v925_v43 = vpop.f32.mrb[4].mxu1  ;;  %v904_v44 = vpop.f32.mrb[5].mxu0 }
 0x14e   :  { %v905_v45 = vadd.f32 %v904_v44, %v903_v42  ;;  %v926_v46 = vpop.f32.mrb[5].mxu1  ;;  %v906_v47 = vpop.f32.mrb[6].mxu0 }
 0x14f   :  { %v927_v48 = vadd.f32 %v926_v46, %v925_v43  ;;  %v928_v49 = vpop.f32.mrb[6].mxu1  ;;  %v907_v50 = vpop.f32.mrb[7].mxu0 }
 0x150   :  { %v712_v51 = vadd.f32 %v905_v45, %v671_v39  ;;  %v908_v52 = vadd.f32 %v907_v50, %v906_v47  ;;  %v929_v53 = vpop.f32.mrb[7].mxu1 }
 0x151   :  { %v930_v54 = vadd.f32 %v929_v53, %v928_v49 }
 0x152   :  { %v753_v55 = vadd.f32 %v927_v48, %v712_v51  ;;  %v715_v56 = vadd.f32 %v908_v52, %v674_v41 }
 0x154   :  { %759 = vst [vmem:[#allocation8] sm:$0xff] %v753_v55  ;;  %v756_v57 = vadd.f32 %v930_v54, %v715_v56 }
 0x156   :  { %760 = vst [vmem:[#allocation8 + $0x8] sm:$0xff] %v756_v57 }
 0x157   :  { %1081 = shalt.err (!%p1078_p0)
}
 0x158   :  { %s1082_s28 = scalar_lea.hbm %s1184_s3, 256 }
 0x159   :  { %p1083_p1 = scmp.ne.s32.totalorder %s1184_s3, %s1082_s28  ;;  %p1086_p2 = scmp.lt.u32.totalorder %s1082_s28, %s1184_s3 }
 0x15b   :  { %p1088_p3 = pnand %p1086_p2, %p1083_p1 }
 0x15d   :  { %1091 = shalt.err (!%p1088_p3)
}
 0x15e   :  { %772 = dma.vmem_to_hbm [thread:$0]  %s767_s24, 256, %s1184_s3, [#allocation4], %s1104_s0, %s1104_s0, %s1105_s21  }
 0x15f   :  { %1096 = dma.done.wait [#allocation4], 256  }
 0x160   :  { %1097 = vsyncadd [#allocation4], 4294967040 }
 0x161   :  { %776 = vsyncpa [#allocation3], 1 }
 0x162   :  { %777 = vsyncpa [#allocation6], 1 }
 0x163   :  { %778 = vsyncpa [#allocation4], 1 }

</bundles_post_ra>
